<compile_context>
chip_gen: v6e
topology: v6e:2x2x1
jax: 0.10.0
libtpu: 0.0.40
codegen_flags: <defaults>
</compile_context>

<pallas_src>
import functools
import math

import jax
import jax.numpy as jnp
from jax.experimental import pallas as pl
from jax.experimental.pallas import tpu as pltpu

NUM_HEADS = 4
D_MODEL = 32
D_K = D_MODEL // NUM_HEADS
SEQ = 8
BATCH = 2


def _mha_kernel(q_ref, k_ref, v_ref, wq_ref, wk_ref, wv_ref, b_qkv_ref,
                wo_ref, bo_ref, out_ref, *, batch, seq, d_model, num_heads):
    d_k = d_model // num_heads
    bs = batch * seq
    g = batch * num_heads

    b_qkv = b_qkv_ref[...]                                   # (3, D)

    # Three un-padded projections (no block-diagonal zeros, no sub-128-lane
    # extraction of a fused projection). 1/sqrt(d_k) is pre-folded into wq/bq.
    qp = jnp.dot(q_ref[...], wq_ref[...],
                 preferred_element_type=jnp.float32) + b_qkv[0:1, :]
    kp = jnp.dot(k_ref[...], wk_ref[...],
                 preferred_element_type=jnp.float32) + b_qkv[1:2, :]
    vp = jnp.dot(v_ref[...], wv_ref[...],
                 preferred_element_type=jnp.float32) + b_qkv[2:3, :]

    # (B*S, D) -> (B*H, S, d_k): all heads batched into one leading dim so the
    # score / context contractions are two einsums and ONE softmax (no head loop).
    def to_heads(x):
        return (x.reshape(batch, seq, num_heads, d_k)
                 .transpose(0, 2, 1, 3)
                 .reshape(g, seq, d_k))

    qh = to_heads(qp)
    kh = to_heads(kp)
    vh = to_heads(vp)

    # Scores already carry the 1/sqrt(d_k) scale (folded into Wq on host).
    s = jnp.einsum('gqd,gkd->gqk', qh, kh, preferred_element_type=jnp.float32)
    s = s - jnp.max(s, axis=-1, keepdims=True)
    e = jnp.exp(s)
    p = e * pl.reciprocal(jnp.sum(e, axis=-1, keepdims=True), approx=True)
    ctx = jnp.einsum('gqk,gkd->gqd', p, vh, preferred_element_type=jnp.float32)

    # Merge heads back to (B*S, D); single D-wide output projection + bias.
    ctx = (ctx.reshape(batch, num_heads, seq, d_k)
              .transpose(0, 2, 1, 3)
              .reshape(bs, d_model))
    out = jnp.dot(ctx, wo_ref[...], preferred_element_type=jnp.float32) + bo_ref[...]
    out_ref[...] = out.astype(out_ref.dtype)
    # TODO(synk): optional attention mask (masked_fill) path not wired in (mask=None only).


def prepare_params(params, num_heads=NUM_HEADS):
    """One-time, hoisted host-side weight packing (NOT on the per-call path).

    Pre-transposes all Linear weights, folds the 1/sqrt(d_k) attention scale
    into the Q weight/bias, and stacks the QKV biases into a single (3, D) slab.
    """
    wq, bq, wk, bk, wv, bv, wo, bo = params
    d_model = wq.shape[0]
    scale = 1.0 / math.sqrt(d_model // num_heads)
    wq_t = wq.T * scale                       # x @ wq_t == scale * (x @ wq.T)
    wk_t = wk.T
    wv_t = wv.T
    b_qkv = jnp.stack([bq * scale, bk, bv], axis=0)   # (3, D)
    wo_t = wo.T                               # kernel computes ctx @ wo_t
    bo2 = bo.reshape(1, d_model)
    return (wq_t, wk_t, wv_t, b_qkv, wo_t, bo2)


@jax.jit
def multi_head_attention(q, k, v, prepared):
    B, S, D = q.shape
    wq_t, wk_t, wv_t, b_qkv, wo_t, bo2 = prepared

    kernel = functools.partial(_mha_kernel, batch=B, seq=S, d_model=D,
                               num_heads=NUM_HEADS)
    vmem = pl.BlockSpec(memory_space=pltpu.MemorySpace.VMEM)

    out_flat = pl.pallas_call(
        kernel,
        out_shape=jax.ShapeDtypeStruct((B * S, D), q.dtype),
        in_specs=[vmem] * 9,          # whole arrays resident in VMEM, no grid
        out_specs=vmem,
    )(q.reshape(B * S, D), k.reshape(B * S, D), v.reshape(B * S, D),
      wq_t, wk_t, wv_t, b_qkv, wo_t, bo2)
    return out_flat.reshape(B, S, D)


def _reference(q, k, v, params):
    wq, bq, wk, bk, wv, bv, wo, bo = params
    B, S, D = q.shape

    def proj(x, w, b):
        return x @ w.T + b

    qp = proj(q, wq, bq).reshape(B, S, NUM_HEADS, D_K).transpose(0, 2, 1, 3)
    kp = proj(k, wk, bk).reshape(B, S, NUM_HEADS, D_K).transpose(0, 2, 1, 3)
    vp = proj(v, wv, bv).reshape(B, S, NUM_HEADS, D_K).transpose(0, 2, 1, 3)
    s = jnp.einsum("bhqd,bhkd->bhqk", qp, kp) / math.sqrt(D_K)
    p = jax.nn.softmax(s, axis=-1)
    ctx = jnp.einsum("bhqk,bhkd->bhqd", p, vp)
    ctx = ctx.transpose(0, 2, 1, 3).reshape(B, S, D)
    return ctx @ wo.T + bo


def _init_params(key):
    # Deterministic init mimicking nn.Linear default: U(-1/sqrt(fan_in), 1/sqrt(fan_in)).
    bound = 1.0 / math.sqrt(D_MODEL)
    keys = jax.random.split(key, 8)
    wq = jax.random.uniform(keys[0], (D_MODEL, D_MODEL), jnp.float32, -bound, bound)
    bq = jax.random.uniform(keys[1], (D_MODEL,), jnp.float32, -bound, bound)
    wk = jax.random.uniform(keys[2], (D_MODEL, D_MODEL), jnp.float32, -bound, bound)
    bk = jax.random.uniform(keys[3], (D_MODEL,), jnp.float32, -bound, bound)
    wv = jax.random.uniform(keys[4], (D_MODEL, D_MODEL), jnp.float32, -bound, bound)
    bv = jax.random.uniform(keys[5], (D_MODEL,), jnp.float32, -bound, bound)
    wo = jax.random.uniform(keys[6], (D_MODEL, D_MODEL), jnp.float32, -bound, bound)
    bo = jax.random.uniform(keys[7], (D_MODEL,), jnp.float32, -bound, bound)
    return (wq, bq, wk, bk, wv, bv, wo, bo)


if __name__ == "__main__":
    root = jax.random.PRNGKey(0)
    kparam, kq, kk, kv = jax.random.split(root, 4)
    params = _init_params(kparam)
    prepared = prepare_params(params)          # one-time packing, hoisted off the call path

    q = jax.random.normal(kq, (BATCH, SEQ, D_MODEL), jnp.float32)
    k = jax.random.normal(kk, (BATCH, SEQ, D_MODEL), jnp.float32)
    v = jax.random.normal(kv, (BATCH, SEQ, D_MODEL), jnp.float32)

    out = multi_head_attention(q, k, v, prepared)
    out = jax.block_until_ready(out)

    ref = _reference(q, k, v, params)
    assert out.shape == (BATCH, SEQ, D_MODEL)
    # 1e-3 tolerance accounts for the EUP approximate reciprocal in softmax.
    assert jnp.allclose(out, ref, atol=1e-3, rtol=1e-3), "mismatch vs JAX reference"
    print("KERNEL_OK")
</pallas_src>

<mosaic_0001>
module attributes {stable_mosaic.version = 11 : i64} {
  func.func @_mha_kernel(%arg0: memref<16x32xf32, #tpu.memory_space<vmem>>, %arg1: memref<16x32xf32, #tpu.memory_space<vmem>>, %arg2: memref<16x32xf32, #tpu.memory_space<vmem>>, %arg3: memref<32x32xf32, #tpu.memory_space<vmem>>, %arg4: memref<32x32xf32, #tpu.memory_space<vmem>>, %arg5: memref<32x32xf32, #tpu.memory_space<vmem>>, %arg6: memref<3x32xf32, #tpu.memory_space<vmem>>, %arg7: memref<32x32xf32, #tpu.memory_space<vmem>>, %arg8: memref<1x32xf32, #tpu.memory_space<vmem>>, %arg9: memref<16x32xf32, #tpu.memory_space<vmem>>) attributes {dimension_semantics = [], scalar_prefetch = 0 : i64, scratch_operands = 0 : i64, tpu.core_type = #tpu.core_type<tc>} {
    %c0 = arith.constant 0 : index
    %c0_0 = arith.constant 0 : index
    %0 = vector.load %arg6[%c0, %c0_0] : memref<3x32xf32, #tpu.memory_space<vmem>>, vector<3x32xf32>
    %c0_1 = arith.constant 0 : index
    %c0_2 = arith.constant 0 : index
    %1 = vector.load %arg0[%c0_1, %c0_2] : memref<16x32xf32, #tpu.memory_space<vmem>>, vector<16x32xf32>
    %c0_3 = arith.constant 0 : index
    %c0_4 = arith.constant 0 : index
    %2 = vector.load %arg3[%c0_3, %c0_4] : memref<32x32xf32, #tpu.memory_space<vmem>>, vector<32x32xf32>
    %cst = arith.constant dense<0.000000e+00> : vector<16x32xf32>
    %3 = tpu.matmul %1, %2, %cst {dimension_numbers = #tpu.dot_dimension_numbers<[1], [0], [0], [1], [0, 0, 1, 1], [], []>} : vector<16x32xf32>, vector<32x32xf32>, vector<16x32xf32> -> vector<16x32xf32>
    %4 = vector.extract_strided_slice %0 {offsets = [0, 0], sizes = [1, 32], strides = [1, 1]} : vector<3x32xf32> to vector<1x32xf32>
    %5 = vector.broadcast %4 : vector<1x32xf32> to vector<16x32xf32>
    %6 = arith.addf %3, %5 : vector<16x32xf32>
    %c0_5 = arith.constant 0 : index
    %c0_6 = arith.constant 0 : index
    %7 = vector.load %arg1[%c0_5, %c0_6] : memref<16x32xf32, #tpu.memory_space<vmem>>, vector<16x32xf32>
    %c0_7 = arith.constant 0 : index
    %c0_8 = arith.constant 0 : index
    %8 = vector.load %arg4[%c0_7, %c0_8] : memref<32x32xf32, #tpu.memory_space<vmem>>, vector<32x32xf32>
    %cst_9 = arith.constant dense<0.000000e+00> : vector<16x32xf32>
    %9 = tpu.matmul %7, %8, %cst_9 {dimension_numbers = #tpu.dot_dimension_numbers<[1], [0], [0], [1], [0, 0, 1, 1], [], []>} : vector<16x32xf32>, vector<32x32xf32>, vector<16x32xf32> -> vector<16x32xf32>
    %10 = vector.extract_strided_slice %0 {offsets = [1, 0], sizes = [1, 32], strides = [1, 1]} : vector<3x32xf32> to vector<1x32xf32>
    %11 = vector.broadcast %10 : vector<1x32xf32> to vector<16x32xf32>
    %12 = arith.addf %9, %11 : vector<16x32xf32>
    %c0_10 = arith.constant 0 : index
    %c0_11 = arith.constant 0 : index
    %13 = vector.load %arg2[%c0_10, %c0_11] : memref<16x32xf32, #tpu.memory_space<vmem>>, vector<16x32xf32>
    %c0_12 = arith.constant 0 : index
    %c0_13 = arith.constant 0 : index
    %14 = vector.load %arg5[%c0_12, %c0_13] : memref<32x32xf32, #tpu.memory_space<vmem>>, vector<32x32xf32>
    %cst_14 = arith.constant dense<0.000000e+00> : vector<16x32xf32>
    %15 = tpu.matmul %13, %14, %cst_14 {dimension_numbers = #tpu.dot_dimension_numbers<[1], [0], [0], [1], [0, 0, 1, 1], [], []>} : vector<16x32xf32>, vector<32x32xf32>, vector<16x32xf32> -> vector<16x32xf32>
    %16 = vector.extract_strided_slice %0 {offsets = [2, 0], sizes = [1, 32], strides = [1, 1]} : vector<3x32xf32> to vector<1x32xf32>
    %17 = vector.broadcast %16 : vector<1x32xf32> to vector<16x32xf32>
    %18 = arith.addf %15, %17 : vector<16x32xf32>
    %19 = vector.shape_cast %6 : vector<16x32xf32> to vector<2x8x4x8xf32>
    %20 = tpu.transpose %19, [0, 2, 1, 3] : vector<2x8x4x8xf32> -> vector<2x4x8x8xf32>
    %21 = vector.shape_cast %20 : vector<2x4x8x8xf32> to vector<8x8x8xf32>
    %22 = vector.shape_cast %12 : vector<16x32xf32> to vector<2x8x4x8xf32>
    %23 = tpu.transpose %22, [0, 2, 1, 3] : vector<2x8x4x8xf32> -> vector<2x4x8x8xf32>
    %24 = vector.shape_cast %23 : vector<2x4x8x8xf32> to vector<8x8x8xf32>
    %25 = vector.shape_cast %18 : vector<16x32xf32> to vector<2x8x4x8xf32>
    %26 = tpu.transpose %25, [0, 2, 1, 3] : vector<2x8x4x8xf32> -> vector<2x4x8x8xf32>
    %27 = vector.shape_cast %26 : vector<2x4x8x8xf32> to vector<8x8x8xf32>
    "tpu.trace_start"() <{level = 10 : i32, message = "gqd,gkd->gqk"}> : () -> ()
    %cst_15 = arith.constant dense<0.000000e+00> : vector<8x8x8xf32>
    %28 = tpu.matmul %21, %24, %cst_15 {dimension_numbers = #tpu.dot_dimension_numbers<[2], [2], [1], [1], [0, 0, 0, 1, 1, 1], [0], [0]>} : vector<8x8x8xf32>, vector<8x8x8xf32>, vector<8x8x8xf32> -> vector<8x8x8xf32>
    "tpu.trace_stop"() : () -> ()
    %cst_16 = arith.constant dense<0xFF800000> : vector<8x8xf32>
    %29 = vector.multi_reduction <maximumf>, %28, %cst_16 [2] : vector<8x8x8xf32> to vector<8x8xf32>
    %30 = vector.shape_cast %29 : vector<8x8xf32> to vector<8x8x1xf32>
    %31 = vector.broadcast %30 : vector<8x8x1xf32> to vector<8x8x8xf32>
    %32 = arith.subf %28, %31 : vector<8x8x8xf32>
    %33 = math.exp %32 : vector<8x8x8xf32>
    %cst_17 = arith.constant dense<0.000000e+00> : vector<8x8xf32>
    %34 = vector.multi_reduction <add>, %33, %cst_17 [2] : vector<8x8x8xf32> to vector<8x8xf32>
    %35 = vector.shape_cast %34 : vector<8x8xf32> to vector<8x8x1xf32>
    %36 = tpu.reciprocal %35 {approx = true} : vector<8x8x1xf32> -> vector<8x8x1xf32>
    %37 = vector.broadcast %36 : vector<8x8x1xf32> to vector<8x8x8xf32>
    %38 = arith.mulf %33, %37 : vector<8x8x8xf32>
    "tpu.trace_start"() <{level = 10 : i32, message = "gqk,gkd->gqd"}> : () -> ()
    %cst_18 = arith.constant dense<0.000000e+00> : vector<8x8x8xf32>
    %39 = tpu.matmul %38, %27, %cst_18 {dimension_numbers = #tpu.dot_dimension_numbers<[2], [1], [1], [2], [0, 0, 0, 1, 1, 2], [0], [0]>} : vector<8x8x8xf32>, vector<8x8x8xf32>, vector<8x8x8xf32> -> vector<8x8x8xf32>
    "tpu.trace_stop"() : () -> ()
    %40 = vector.shape_cast %39 : vector<8x8x8xf32> to vector<2x4x8x8xf32>
    %41 = tpu.transpose %40, [0, 2, 1, 3] : vector<2x4x8x8xf32> -> vector<2x8x4x8xf32>
    %42 = vector.shape_cast %41 : vector<2x8x4x8xf32> to vector<16x32xf32>
    %c0_19 = arith.constant 0 : index
    %c0_20 = arith.constant 0 : index
    %43 = vector.load %arg7[%c0_19, %c0_20] : memref<32x32xf32, #tpu.memory_space<vmem>>, vector<32x32xf32>
    %cst_21 = arith.constant dense<0.000000e+00> : vector<16x32xf32>
    %44 = tpu.matmul %42, %43, %cst_21 {dimension_numbers = #tpu.dot_dimension_numbers<[1], [0], [0], [1], [0, 0, 1, 1], [], []>} : vector<16x32xf32>, vector<32x32xf32>, vector<16x32xf32> -> vector<16x32xf32>
    %c0_22 = arith.constant 0 : index
    %c0_23 = arith.constant 0 : index
    %45 = vector.load %arg8[%c0_22, %c0_23] : memref<1x32xf32, #tpu.memory_space<vmem>>, vector<1x32xf32>
    %46 = vector.broadcast %45 : vector<1x32xf32> to vector<16x32xf32>
    %47 = arith.addf %44, %46 : vector<16x32xf32>
    %c0_24 = arith.constant 0 : index
    %c0_25 = arith.constant 0 : index
    %48 = vector.load %arg9[%c0_24, %c0_25] : memref<16x32xf32, #tpu.memory_space<vmem>>, vector<16x32xf32>
    tpu.vector_store %arg9[%c0_24, %c0_25], %47 {strides = array<i32>} : memref<16x32xf32, #tpu.memory_space<vmem>>, vector<16x32xf32>,
    return
  }
}

</mosaic_0001>

<bundles_post_ra>
// kernel: multi_head_attention.1
= control target key start
LH: loop header
LB: loop body
LE: loop exit
PB: predicated region body
PF: predicated region fallthrough
CT: control target
= control target key end

     0   :  { %14 = vsyncpa [#allocation3], 0  ;;  %s3922_s0 = inlined_call_operand.hbm [shape: f32[16,32], index: 0, kind: input, shape index: {}]   ;;  %s3923_s1 = inlined_call_operand.hbm [shape: f32[16,32], index: 1, kind: input, shape index: {}]   ;;  %s3924_s2 = inlined_call_operand.hbm [shape: f32[16,32], index: 2, kind: input, shape index: {}]   ;;  %s3925_s3 = inlined_call_operand.hbm [shape: f32[32,32], index: 3, kind: input, shape index: {}]   ;;  %s3926_s4 = inlined_call_operand.hbm [shape: f32[32,32], index: 4, kind: input, shape index: {}]   ;;  %s3927_s5 = inlined_call_operand.hbm [shape: f32[32,32], index: 5, kind: input, shape index: {}]   ;;  %s3928_s6 = inlined_call_operand.vmem [shape: f32[3,32], index: 6, kind: input, shape index: {}]   ;;  %s3929_s7 = inlined_call_operand.hbm [shape: f32[32,32], index: 7, kind: input, shape index: {}]   ;;  %s3930_s8 = inlined_call_operand.vmem [shape: f32[1,32], index: 8, kind: input, shape index: {}]   ;;  %s3931_s9 = inlined_call_operand.hbm [shape: f32[16,32], index: 9, kind: output, shape index: {}]  }
   0x1   :  { %15 = vsyncpa [#allocation6], 0 }
   0x2   :  { %16 = vsyncpa [#allocation9], 0 }
   0x3   :  { %17 = vsyncpa [#allocation12], 0 }
   0x4   :  { %18 = vsyncpa [#allocation4], 0  ;;  %s3428_s30 = smov [#allocation5]   ;;  %s3429_s11 = smov [#allocation8]  }
   0x5   :  { %s36_s10 = sshll.u32 %s3428_s30, 4  ;;  %s60_s12 = sshll.u32 %s3429_s11, 4  ;;  %s37_s10 = int_to_ptr.vmem [resolvable:$true] %s36_s10  ;;  %s61_s12 = int_to_ptr.vmem [resolvable:$true] %s60_s12 }
   0x6   :  { %s3266_s13 = scalar_lea.vmem %s37_s10, 256  ;;  %p3271_p1 = scmp.lt.s32.totalorder %s37_s10, %s37_s10 }
   0x7   :  { %p3267_p0 = scmp.ne.s32.totalorder %s37_s10, %s3266_s13  ;;  %p3272_p2 = scmp.lt.s32.totalorder %s3266_s13, %s3266_s13 }
   0x9   :  { %p3273_p3 = por %p3272_p2, %p3271_p1 }
   0xb   :  { %p3274_p4 = pnand %p3273_p3, %p3267_p0 }
   0xd   :  { %3277 = shalt.err (!%p3274_p4)
}
   0xe   :  { %s3430_s14 = smov 128   ;;  %s3431_s15 = smov 8  }
   0xf   :  { %42 = dma.hbm_to_vmem [thread:$0]  %s3923_s1, 256, %s37_s10, [#allocation6], %s3430_s14, %s3430_s14, %s3431_s15  }
  0x10   :  { %s3286_s18 = scalar_lea.vmem %s61_s12, 512  ;;  %p3291_p6 = scmp.lt.s32.totalorder %s61_s12, %s61_s12 }
  0x11   :  { %p3287_p5 = scmp.ne.s32.totalorder %s61_s12, %s3286_s18  ;;  %p3292_p7 = scmp.lt.s32.totalorder %s3286_s18, %s3286_s18 }
  0x13   :  { %p3293_p8 = por %p3292_p7, %p3291_p6 }
  0x15   :  { %p3294_p9 = pnand %p3293_p8, %p3287_p5 }
  0x17   :  { %3297 = shalt.err (!%p3294_p9)
}
  0x18   :  { %66 = dma.hbm_to_vmem [thread:$0]  %s3925_s3, 512, %s61_s12, [#allocation9], %s3430_s14, %s3430_s14, %s3431_s15  }
  0x19   :  { %s3432_s21 = smov [#allocation11]   ;;  %s3433_s23 = smov [#allocation2]  }
  0x1a   :  { %s84_s22 = sshll.u32 %s3432_s21, 4  ;;  %s24_s24 = sshll.u32 %s3433_s23, 4  ;;  %s85_s22 = int_to_ptr.vmem [resolvable:$true] %s84_s22  ;;  %s25_s24 = int_to_ptr.vmem [resolvable:$true] %s24_s24 }
  0x1b   :  { %s3306_s1 = scalar_lea.vmem %s85_s22, 512  ;;  %p3311_p11 = scmp.lt.s32.totalorder %s85_s22, %s85_s22 }
  0x1c   :  { %p3307_p10 = scmp.ne.s32.totalorder %s85_s22, %s3306_s1  ;;  %p3312_p12 = scmp.lt.s32.totalorder %s3306_s1, %s3306_s1 }
  0x1e   :  { %p3313_p13 = por %p3312_p12, %p3311_p11 }
  0x20   :  { %p3314_p0 = pnand %p3313_p13, %p3307_p10 }
  0x22   :  { %3317 = shalt.err (!%p3314_p0)
}
  0x23   :  { %90 = dma.hbm_to_vmem [thread:$0]  %s3927_s5, 512, %s85_s22, [#allocation12], %s3430_s14, %s3430_s14, %s3431_s15  }
  0x24   :  { %s3326_s3 = scalar_lea.vmem %s25_s24, 256  ;;  %p3331_p2 = scmp.lt.s32.totalorder %s25_s24, %s25_s24 }
  0x25   :  { %p3327_p1 = scmp.ne.s32.totalorder %s25_s24, %s3326_s3  ;;  %p3332_p3 = scmp.lt.s32.totalorder %s3326_s3, %s3326_s3 }
  0x27   :  { %p3333_p4 = por %p3332_p3, %p3331_p2 }
  0x29   :  { %p3334_p5 = pnand %p3333_p4, %p3327_p1 }
  0x2b   :  { %3337 = shalt.err (!%p3334_p5)
}
  0x2c   :  { %30 = dma.hbm_to_vmem [thread:$0]  %s3922_s0, 256, %s25_s24, [#allocation3], %s3430_s14, %s3430_s14, %s3431_s15  }
  0x2d   :  { %s3434_s29 = smov [#allocation7]   ;;  %s3435_s10 = smov [#allocation10]  }
  0x2e   :  { %s48_s30 = sshll.u32 %s3434_s29, 4  ;;  %s72_s11 = sshll.u32 %s3435_s10, 4  ;;  %s49_s30 = int_to_ptr.vmem [resolvable:$true] %s48_s30  ;;  %s73_s11 = int_to_ptr.vmem [resolvable:$true] %s72_s11 }
  0x2f   :  { %s3346_s5 = scalar_lea.vmem %s49_s30, 256  ;;  %p3351_p7 = scmp.lt.s32.totalorder %s49_s30, %s49_s30 }
  0x30   :  { %p3347_p6 = scmp.ne.s32.totalorder %s49_s30, %s3346_s5  ;;  %p3352_p8 = scmp.lt.s32.totalorder %s3346_s5, %s3346_s5 }
  0x32   :  { %p3353_p9 = por %p3352_p8, %p3351_p7 }
  0x34   :  { %p3354_p10 = pnand %p3353_p9, %p3347_p6 }
  0x36   :  { %3357 = shalt.err (!%p3354_p10)
}
  0x37   :  { %54 = dma.hbm_to_vmem [thread:$0]  %s3924_s2, 256, %s49_s30, [#allocation6], %s3430_s14, %s3430_s14, %s3431_s15  }
  0x38   :  { %s3366_s0 = scalar_lea.vmem %s73_s11, 512  ;;  %p3371_p12 = scmp.lt.s32.totalorder %s73_s11, %s73_s11 }
  0x39   :  { %p3367_p11 = scmp.ne.s32.totalorder %s73_s11, %s3366_s0  ;;  %p3372_p13 = scmp.lt.s32.totalorder %s3366_s0, %s3366_s0 }
  0x3b   :  { %p3373_p0 = por %p3372_p13, %p3371_p12 }
  0x3d   :  { %p3374_p1 = pnand %p3373_p0, %p3367_p11 }
  0x3f   :  { %3377 = shalt.err (!%p3374_p1)
}
  0x40   :  { %78 = dma.hbm_to_vmem [thread:$0]  %s3926_s4, 512, %s73_s11, [#allocation9], %s3430_s14, %s3430_s14, %s3431_s15  }
  0x41   :  { %s3436_s18 = smov [#allocation13]  }
  0x42   :  { %s98_s19 = sshll.u32 %s3436_s18, 4  ;;  %s99_s19 = int_to_ptr.vmem [resolvable:$true] %s98_s19 }
  0x43   :  { %s3386_s20 = scalar_lea.vmem %s99_s19, 512  ;;  %p3391_p3 = scmp.lt.s32.totalorder %s99_s19, %s99_s19 }
  0x44   :  { %p3387_p2 = scmp.ne.s32.totalorder %s99_s19, %s3386_s20  ;;  %p3392_p4 = scmp.lt.s32.totalorder %s3386_s20, %s3386_s20 }
  0x46   :  { %p3393_p5 = por %p3392_p4, %p3391_p3 }
  0x48   :  { %p3394_p6 = pnand %p3393_p5, %p3387_p2 }
  0x4a   :  { %3397 = shalt.err (!%p3394_p6)
}
  0x4b   :  { %104 = dma.hbm_to_vmem [thread:$0]  %s3929_s7, 512, %s99_s19, [#allocation12], %s3430_s14, %s3430_s14, %s3431_s15  }
  0x4c   :  { %3418 = dma.done.wait [#allocation3], 256  }
  0x4d   :  { %3419 = vsyncadd [#allocation3], 4294967040 }
  0x4e   :  { %3420 = dma.done.wait [#allocation6], 512  }
  0x4f   :  { %3421 = vsyncadd [#allocation6], 4294966784 }
  0x50   :  { %3422 = dma.done.wait [#allocation9], 1024  }
  0x51   :  { %3423 = vsyncadd [#allocation9], 4294966272 }
  0x52   :  { %3424 = dma.done.wait [#allocation12], 1024  }
  0x53   :  { %3425 = vsyncadd [#allocation12], 4294966272  ;;  %v226_v0 = vld [vmem:[#allocation10 + $0x18] sm:$0xff]  ;;  %v225_v2 = vld [vmem:[#allocation10 + $0x10] sm:$0xff]  ;;  %vm139_vm0 = vcmask 261120   ;;  %v135_v12 = vlaneseq  ;;  %s3437_s22 = smov 104  }
  0x54   :  { %v134_v1 = vld [vmem:[#allocation8 + $0x18] sm:$0xff]  ;;  %3094 = vmatprep.subr.mxu1 %v226_v0  ;;  %v133_v3 = vld [vmem:[#allocation8 + $0x10] sm:$0xff]  ;;  %v224_v4 = vld [vmem:[#allocation10 + $0x8] sm:$0xff]  ;;  %s3438_s23 = smov 120   ;;  %v3440_v27 = vmov 0.0   ;;  %vm3441_vm1 = vmmov 0  }
  0x55   :  { %3083 = vmatprep.subr.mxu0 %v134_v1  ;;  %3095 = vmatpush3.msra.mxu1 %v226_v0  ;;  %v132_v5 = vld [vmem:[#allocation8 + $0x8] sm:$0xff]  ;;  %v223_v6 = vld [vmem:[#allocation10] sm:$0xff]  ;;  %v129_v10 = vld [vmem:[#allocation2] sm:$0xff]  ;;  %v3543_v13 = vshrl.u32 %v135_v12, 7  ;;  %v3442_v34 = vmov 1983009808  }
  0x56   :  { %3084 = vmatpush3.msra.mxu0 %v134_v1  ;;  %3096 = vmatprep.subr.mxu1 %v225_v2  ;;  %v221_v7 = vld [vmem:[#allocation5] sm:$0xff]  ;;  %v222_v9 = vld [vmem:[#allocation5 + $0x8] sm:$0xff]  ;;  %v130_v11 = vld [vmem:[#allocation2 + $0x8] sm:$0xff]  ;;  %v426_v35 = vunpack.c.l.s4 %v3442_v34  ;;  %v3443_v36 = vmov 1934713408   ;;  %vm1279_vm2 = vcmask 64512  }
  0x57   :  { %3085 = vmatprep.subr.mxu0 %v133_v3  ;;  %3097 = vmatpush3.msra.mxu1 %v225_v2  ;;  %v131_v8 = vld [vmem:[#allocation8] sm:$0xff]  ;;  %v229_v14 = vsub.s32 1, %v3543_v13  ;;  %v3549_v15 = vld [vmem:[%s3928_s6] sm:$0x7]  ;;  %v137_v16 = vsub.s32 0, %v3543_v13  ;;  %s3439_s6 = smov 112   ;;  %v458_v37 = vunpack.c.l.s4 %v3443_v36 }
  0x58   :  { %3086 = vmatpush3.msra.mxu0 %v133_v3  ;;  %3098 = vmatprep.subr.mxu1 %v224_v4  ;;  %v317_v28 = vld [vmem:[#allocation11 + $0x18] sm:$0xff]  ;;  %v316_v29 = vld [vmem:[#allocation11 + $0x10] sm:$0xff]  ;;  %v315_v30 = vld [vmem:[#allocation11 + $0x8] sm:$0xff]  ;;  %v427_v38 = vunpack.c.0.s8 %v426_v35  ;;  %s3444_s24 = smov 16   ;;  %s3445_s1 = smov 24   ;;  %vm2858_vm3 = vcmask 130048  }
  0x59   :  { %3087 = vmatprep.subr.mxu0 %v132_v5  ;;  %3099 = vmatpush3.msra.mxu1 %v224_v4  ;;  %v230_v18 = vrot.slane %v3549_v15, %v229_v14  ;;  %v138_v21 = vrot.slane %v3549_v15, %v137_v16  ;;  %v314_v31 = vld [vmem:[#allocation11] sm:$0xff]  ;;  %v312_v32 = vld [vmem:[#allocation7] sm:$0xff]  ;;  %v313_v33 = vld [vmem:[#allocation7 + $0x8] sm:$0xff]  ;;  %v459_v41 = vunpack.c.0.s8 %v458_v37  ;;  %vm2861_vm4 = vcmask 195584   ;;  %s3446_s3 = smov [#allocation14]  }
  0x5a   :  { %3088 = vmatpush3.msra.mxu0 %v132_v5  ;;  %3100 = vmatprep.subr.mxu1 %v223_v6  ;;  %v3590_v42 = vsub.s32 %v427_v38, %v3543_v13  ;;  %s2963_s27 = sshll.u32 %s3446_s3, 4  ;;  %s2964_s27 = int_to_ptr.vmem [resolvable:$true] %s2963_s27 }
  0x5b   :  { %3102 = vmatprep.mubr.msk.f32.mxu1 %vm139_vm0, %v221_v7  ;;  %3101 = vmatpush3.msra.mxu1 %v223_v6  ;;  %v3593_v49 = vsub.s32 %v459_v41, %v3543_v13  ;;  %s3398_s28 = scalar_lea.vmem %s2964_s27, 256  ;;  %p3403_p8 = scmp.lt.s32.totalorder %s2964_s27, %s2964_s27 }
  0x5c   :  { %3089 = vmatprep.subr.mxu0 %v131_v8  ;;  %3103 = vmatmul.mubr.msk.f32.vlgmr.msra.gmra.mxu1 %vm139_vm0, %v222_v9  ;;  %p3399_p7 = scmp.ne.s32.totalorder %s2964_s27, %s3398_s28  ;;  %p3404_p9 = scmp.lt.s32.totalorder %s3398_s28, %s3398_s28 }
  0x5d   :  { %3090 = vmatpush3.msra.mxu0 %v131_v8  ;;  %3091 = vmatprep.mubr.msk.f32.mxu0 %vm139_vm0, %v129_v10 }
  0x5e   :  { %3092 = vmatmul.mubr.msk.f32.vlgmr.msra.gmra.mxu0 %vm139_vm0, %v130_v11  ;;  %3116 = vmatprep.subr.mxu1 %v3440_v27  ;;  %p3405_p10 = por %p3404_p9, %p3403_p8 }
  0x5f   :  { %3105 = vmatprep.subr.mxu0 %v317_v28  ;;  %3118 = vmatprep.mubr.msk.f32.mxu1 %vm3441_vm1, %v3440_v27 }
  0x60   :  { %3106 = vmatpush3.msra.mxu0 %v317_v28  ;;  %3113 = vmatprep.mubr.msk.f32.mxu0 %vm139_vm0, %v312_v32  ;;  %p3406_p11 = pnand %p3405_p10, %p3399_p7 }
  0x61   :  { %3107 = vmatprep.subr.mxu0 %v316_v29 }
  0x62   :  { %3108 = vmatpush3.msra.mxu0 %v316_v29 }
  0x63   :  { %3109 = vmatprep.subr.mxu0 %v315_v30 }
  0x64   :  { %3110 = vmatpush3.msra.mxu0 %v315_v30 }
  0x65   :  { %3111 = vmatprep.subr.mxu0 %v314_v31 }
  0x66   :  { %3112 = vmatpush3.msra.mxu0 %v314_v31 }
  0x67   :  { %3136 = vmatprep.subr.mxu0 %v3440_v27  ;;  %3114 = vmatmul.mubr.msk.f32.vlgmr.msra.gmra.mxu0 %vm139_vm0, %v313_v33 }
  0x68   :  { %3138 = vmatprep.mubr.msk.f32.mxu0 %vm3441_vm1, %v3440_v27 }
 0x11c   :  { %v3104_v17 = vpop.f32.mrf.mxu1 }
 0x11d   :  { %v3565_v25 = vadd.f32 %v3104_v17, %v230_v18 }
 0x11e   :  { %v3093_v19 = vpop.f32.mrf.mxu0  ;;  %v303_v20 = vpop.f32.mrf.mxu1 }
 0x11f   :  { %v304_v22 = vadd.f32 %v303_v20, %v230_v18  ;;  %v3571_v26 = vadd.f32 %v3093_v19, %v138_v21 }
 0x120   :  { %v212_v23 = vpop.f32.mrf.mxu0 }
 0x121   :  { %709 = vrot.lane.b32.xlu1 %v304_v22, %s3437_s22  ;;  %697 = vrot.lane.b32.xlu0 %v304_v22, %s3438_s23  ;;  %v3556_v24 = vadd.f32 %v212_v23, %v138_v21 }
 0x125   :  { %703 = vrot.lane.b32.xlu0 %v304_v22, %s3439_s6  ;;  %405 = vrot.lane.b32.xlu1 %v3556_v24, %s3438_s23 }
 0x129   :  { %411 = vrot.lane.b32.xlu0 %v3556_v24, %s3439_s6  ;;  %417 = vrot.lane.b32.xlu1 %v3556_v24, %s3437_s22 }
 0x12d   :  { %699 = vrot.lane.b32.xlu0 %v3565_v25, %s3438_s23  ;;  %705 = vrot.lane.b32.xlu1 %v3565_v25, %s3439_s6 }
 0x131   :  { %711 = vrot.lane.b32.xlu0 %v3565_v25, %s3437_s22  ;;  %407 = vrot.lane.b32.xlu1 %v3571_v26, %s3438_s23 }
 0x135   :  { %413 = vrot.lane.b32.xlu0 %v3571_v26, %s3439_s6  ;;  %419 = vrot.lane.b32.xlu1 %v3571_v26, %s3437_s22 }
 0x193   :  { %v710_v39 = vpop.permute.xlu1 %709  ;;  %v698_v40 = vpop.permute.xlu0 %697 }
 0x194   :  { %v731_v43 = vcombine.low %v698_v40, %v710_v39  ;;  %v732_v44 = vcombine.high %v698_v40, %v710_v39 }
 0x196   :  { %v739_v50 = vrot.slane %v731_v43, %v3590_v42  ;;  %v746_v51 = vrot.slane %v732_v44, %v3590_v42 }
 0x197   :  { %v704_v45 = vpop.permute.xlu0 %703  ;;  %v406_v46 = vpop.permute.xlu1 %405 }
 0x198   :  { %v715_v47 = vcombine.low %v304_v22, %v704_v45  ;;  %v716_v48 = vcombine.high %v304_v22, %v704_v45 }
 0x19a   :  { %v723_v52 = vrot.slane %v715_v47, %v3590_v42  ;;  %v730_v53 = vrot.slane %v716_v48, %v3590_v42 }
 0x19b   :  { %v412_v54 = vpop.permute.xlu0 %411  ;;  %v418_v55 = vpop.permute.xlu1 %417 }
 0x19c   :  { %v747_v56 = vcombine.low %v723_v52, %v739_v50  ;;  %v748_v57 = vcombine.high %v723_v52, %v739_v50  ;;  %v763_v58 = vcombine.low %v730_v53, %v746_v51  ;;  %v764_v59 = vcombine.high %v730_v53, %v746_v51 }
 0x19d   :  { %v423_v60 = vcombine.low %v3556_v24, %v412_v54  ;;  %v424_v61 = vcombine.high %v3556_v24, %v412_v54  ;;  %v439_v62 = vcombine.low %v406_v46, %v418_v55  ;;  %v440_v63 = vcombine.high %v406_v46, %v418_v55 }
 0x19e   :  { %v755_v0 = vrot.slane %v747_v56, %v3593_v49  ;;  %v762_v1 = vrot.slane %v748_v57, %v3593_v49  ;;  %v771_v2 = vrot.slane %v763_v58, %v3593_v49  ;;  %v778_v3 = vrot.slane %v764_v59, %v3593_v49 }
 0x19f   :  { %v431_v4 = vrot.slane %v423_v60, %v3590_v42  ;;  %v438_v5 = vrot.slane %v424_v61, %v3590_v42  ;;  %v447_v6 = vrot.slane %v439_v62, %v3590_v42  ;;  %v454_v7 = vrot.slane %v440_v63, %v3590_v42  ;;  %v700_v8 = vpop.permute.xlu0 %699  ;;  %v706_v9 = vpop.permute.xlu1 %705 }
 0x1a0   :  { %v851_v10 = vcombine.low %v755_v0, %v762_v1  ;;  %v2988_v11 = vcombine.high %v755_v0, %v762_v1  ;;  %v867_v12 = vcombine.low %v771_v2, %v778_v3  ;;  %v2989_v14 = vcombine.high %v771_v2, %v778_v3 }
 0x1a1   :  { %v455_v16 = vcombine.low %v431_v4, %v447_v6  ;;  %v456_v17 = vcombine.high %v431_v4, %v447_v6  ;;  %v471_v18 = vcombine.low %v438_v5, %v454_v7  ;;  %v472_v19 = vcombine.high %v438_v5, %v454_v7 }
 0x1a2   :  { %v3614_v29 = vrot.slane %v851_v10, %v3590_v42  ;;  %v3617_v30 = vrot.slane %v2988_v11, %v3590_v42  ;;  %v3620_v31 = vrot.slane %v867_v12, %v3590_v42  ;;  %v3623_v32 = vrot.slane %v2989_v14, %v3590_v42 }
 0x1a3   :  { %v463_v20 = vrot.slane %v455_v16, %v3593_v49  ;;  %v470_v21 = vrot.slane %v456_v17, %v3593_v49  ;;  %v479_v22 = vrot.slane %v471_v18, %v3593_v49  ;;  %v486_v23 = vrot.slane %v472_v19, %v3593_v49  ;;  %v712_v24 = vpop.permute.xlu0 %711  ;;  %v408_v28 = vpop.permute.xlu1 %407 }
 0x1a4   :  { %v783_v37 = vcombine.low %v3565_v25, %v706_v9  ;;  %v784_v38 = vcombine.high %v3565_v25, %v706_v9  ;;  %v799_v39 = vcombine.low %v700_v8, %v712_v24  ;;  %v800_v40 = vcombine.high %v700_v8, %v712_v24 }
 0x1a5   :  { %v559_v33 = vcombine.low %v463_v20, %v470_v21  ;;  %v2984_v34 = vcombine.high %v463_v20, %v470_v21  ;;  %v575_v35 = vcombine.low %v479_v22, %v486_v23  ;;  %v2985_v36 = vcombine.high %v479_v22, %v486_v23 }
 0x1a6   :  { %v791_v46 = vrot.slane %v783_v37, %v3590_v42  ;;  %v798_v47 = vrot.slane %v784_v38, %v3590_v42  ;;  %v807_v25 = vrot.slane %v799_v39, %v3590_v42  ;;  %v814_v48 = vrot.slane %v800_v40, %v3590_v42 }
 0x1a7   :  { %v3628_v41 = vrot.slane %v559_v33, %v3590_v42  ;;  %v3631_v43 = vrot.slane %v2984_v34, %v3590_v42  ;;  %v3634_v44 = vrot.slane %v575_v35, %v3590_v42  ;;  %v3637_v45 = vrot.slane %v2985_v36, %v3590_v42  ;;  %v414_v50 = vpop.permute.xlu0 %413  ;;  %v420_v51 = vpop.permute.xlu1 %419 }
 0x1a8   :  { %v883_v52 = vcombine.low %v3614_v29, %v3617_v30  ;;  %v899_v53 = vcombine.low %v3620_v31, %v3623_v32  ;;  %v815_v56 = vcombine.low %v791_v46, %v807_v25  ;;  %v816_v57 = vcombine.high %v791_v46, %v807_v25 }
 0x1a9   :  { %v591_v54 = vcombine.low %v3628_v41, %v3631_v43  ;;  %v607_v55 = vcombine.low %v3634_v44, %v3637_v45  ;;  %v831_v58 = vcombine.low %v798_v47, %v814_v48  ;;  %v832_v59 = vcombine.high %v798_v47, %v814_v48 }
 0x1aa   :  { %v491_v60 = vcombine.low %v3571_v26, %v414_v50  ;;  %v492_v61 = vcombine.high %v3571_v26, %v414_v50  ;;  %v507_v62 = vcombine.low %v408_v28, %v420_v51  ;;  %v508_v63 = vcombine.high %v408_v28, %v420_v51 }
 0x1ab   :  { %v823_v0 = vrot.slane %v815_v56, %v3593_v49  ;;  %v830_v1 = vrot.slane %v816_v57, %v3593_v49  ;;  %v839_v2 = vrot.slane %v831_v58, %v3593_v49  ;;  %v846_v3 = vrot.slane %v832_v59, %v3593_v49 }
 0x1ac   :  { %v499_v4 = vrot.slane %v491_v60, %v3590_v42  ;;  %v506_v5 = vrot.slane %v492_v61, %v3590_v42  ;;  %v515_v6 = vrot.slane %v507_v62, %v3590_v42  ;;  %v522_v7 = vrot.slane %v508_v63, %v3590_v42 }
 0x1ad   :  { %v919_v8 = vcombine.low %v823_v0, %v830_v1  ;;  %v2990_v26 = vcombine.high %v823_v0, %v830_v1  ;;  %v935_v9 = vcombine.low %v839_v2, %v846_v3  ;;  %v2991_v10 = vcombine.high %v839_v2, %v846_v3 }
 0x1ae   :  { %v523_v11 = vcombine.low %v499_v4, %v515_v6  ;;  %v524_v12 = vcombine.high %v499_v4, %v515_v6  ;;  %v539_v14 = vcombine.low %v506_v5, %v522_v7  ;;  %v540_v16 = vcombine.high %v506_v5, %v522_v7 }
 0x1af   :  { %v926_v17 = vrot.slane %v919_v8, %v3590_v42  ;;  %v934_v18 = vrot.slane %v2990_v26, %v3590_v42  ;;  %v942_v19 = vrot.slane %v935_v9, %v3590_v42  ;;  %v950_v20 = vrot.slane %v2991_v10, %v3590_v42 }
 0x1b0   :  { %v531_v21 = vrot.slane %v523_v11, %v3593_v49  ;;  %v538_v22 = vrot.slane %v524_v12, %v3593_v49  ;;  %v547_v23 = vrot.slane %v539_v14, %v3593_v49  ;;  %v554_v24 = vrot.slane %v540_v16, %v3593_v49 }
 0x1b1   :  { %v951_v28 = vcombine.low %v926_v17, %v934_v18  ;;  %v967_v33 = vcombine.low %v942_v19, %v950_v20  ;;  %v891_v38 = vrot.slane %v883_v52, %v3593_v49  ;;  %v907_v39 = vrot.slane %v899_v53, %v3593_v49 }
 0x1b2   :  { %v627_v34 = vcombine.low %v531_v21, %v538_v22  ;;  %v2986_v35 = vcombine.high %v531_v21, %v538_v22  ;;  %v643_v36 = vcombine.low %v547_v23, %v554_v24  ;;  %v2987_v37 = vcombine.high %v547_v23, %v554_v24 }
 0x1b3   :  { %v599_v40 = vrot.slane %v591_v54, %v3593_v49  ;;  %v615_v46 = vrot.slane %v607_v55, %v3593_v49  ;;  %v884_v51 = vcombine.high %v3614_v29, %v3617_v30  ;;  %v900_v52 = vcombine.high %v3620_v31, %v3623_v32 }
 0x1b4   :  { %v634_v47 = vrot.slane %v627_v34, %v3590_v42  ;;  %v642_v25 = vrot.slane %v2986_v35, %v3590_v42  ;;  %v650_v48 = vrot.slane %v643_v36, %v3590_v42  ;;  %v658_v50 = vrot.slane %v2987_v37, %v3590_v42 }
 0x1b5   :  { %v915_v56 = vcombine.low %v891_v38, %v907_v39  ;;  %v623_v54 = vcombine.low %v599_v40, %v615_v46  ;;  %v592_v55 = vcombine.high %v3628_v41, %v3631_v43  ;;  %v608_v58 = vcombine.high %v3634_v44, %v3637_v45 }
 0x1b6   :  { %v659_v53 = vcombine.low %v634_v47, %v642_v25  ;;  %v675_v57 = vcombine.low %v650_v48, %v658_v50  ;;  %v952_v59 = vcombine.high %v926_v17, %v934_v18  ;;  %v968_v60 = vcombine.high %v942_v19, %v950_v20  ;;  %v3115_v20 = vpop.f32.mrf.mxu0 }
 0x1b7   :  { %3117 = vmatpush3.xpose.msk.msra.mxu1 %vm1279_vm2, %v915_v56  ;;  %v959_v29 = vrot.slane %v951_v28, %v3593_v49  ;;  %v975_v30 = vrot.slane %v967_v33, %v3593_v49  ;;  %v916_v61 = vcombine.high %v891_v38, %v907_v39  ;;  %v898_v41 = vrot.slane %v884_v51, %v3593_v49 }
 0x1b8   :  { %3121 = vmatprep.subr.mxu1 %v3440_v27  ;;  %v667_v31 = vrot.slane %v659_v53, %v3593_v49  ;;  %v683_v32 = vrot.slane %v675_v57, %v3593_v49  ;;  %v914_v43 = vrot.slane %v900_v52, %v3593_v49  ;;  %v660_v44 = vcombine.high %v634_v47, %v642_v25  ;;  %v394_v33 = vpop.f32.mrf.mxu0 }
 0x1b9   :  { %v676_v45 = vcombine.high %v650_v48, %v658_v50  ;;  %v983_v62 = vcombine.low %v959_v29, %v975_v30  ;;  %v624_v63 = vcombine.high %v599_v40, %v615_v46  ;;  %v966_v0 = vrot.slane %v952_v59, %v3593_v49 }
 0x1ba   :  { %3119 = vmatmul.mubr.msk.f32.vlgmr.msra.gmra.mxu1 %vm1279_vm2, %v623_v54  ;;  %v982_v1 = vrot.slane %v968_v60, %v3593_v49  ;;  %v606_v2 = vrot.slane %v592_v55, %v3593_v49  ;;  %v622_v3 = vrot.slane %v608_v58, %v3593_v49  ;;  %v691_v4 = vcombine.low %v667_v31, %v683_v32 }
 0x1bb   :  { %3122 = vmatpush3.xpose.msk.msra.mxu1 %vm1279_vm2, %v916_v61  ;;  %3123 = vmatprep.mubr.msk.f32.mxu1 %vm3441_vm1, %v3440_v27  ;;  %v917_v5 = vcombine.low %v898_v41, %v914_v43  ;;  %v674_v6 = vrot.slane %v660_v44, %v3593_v49  ;;  %v690_v7 = vrot.slane %v676_v45, %v3593_v49  ;;  %v320_v18 = vsub.s32 2, %v3543_v13 }
 0x1bc   :  { %3126 = vmatprep.subr.mxu1 %v3440_v27  ;;  %3137 = vmatpush3.xpose.msk.msra.mxu0 %vm1279_vm2, %v983_v62  ;;  %v985_v8 = vcombine.low %v966_v0, %v982_v1  ;;  %v625_v26 = vcombine.low %v606_v2, %v622_v3  ;;  %v918_v9 = vcombine.high %v898_v41, %v914_v43 }
 0x1bd   :  { %3146 = vmatprep.subr.mxu0 %v3440_v27  ;;  %v693_v10 = vcombine.low %v674_v6, %v690_v7  ;;  %v626_v11 = vcombine.high %v606_v2, %v622_v3  ;;  %v984_v12 = vcombine.high %v959_v29, %v975_v30  ;;  %v692_v14 = vcombine.high %v667_v31, %v683_v32 }
 0x1be   :  { %3124 = vmatmul.mubr.msk.f32.vlgmr.msra.gmra.mxu1 %vm1279_vm2, %v624_v63  ;;  %v986_v16 = vcombine.high %v966_v0, %v982_v1  ;;  %v694_v17 = vcombine.high %v674_v6, %v690_v7  ;;  %v321_v19 = vrot.slane %v3549_v15, %v320_v18 }
 0x1bf   :  { %3127 = vmatpush3.xpose.msk.msra.mxu1 %vm1279_vm2, %v917_v5  ;;  %3128 = vmatprep.mubr.msk.f32.mxu1 %vm3441_vm1, %v3440_v27 }
 0x1c0   :  { %3131 = vmatprep.subr.mxu1 %v3440_v27  ;;  %3139 = vmatmul.mubr.msk.f32.vlgmr.msra.gmra.mxu0 %vm1279_vm2, %v691_v4  ;;  %v3739_v21 = vadd.f32 %v3115_v20, %v321_v19  ;;  %v395_v55 = vadd.f32 %v394_v33, %v321_v19 }
 0x1c1   :  { %3147 = vmatpush3.xpose.msk.msra.mxu0 %vm1279_vm2, %v985_v8  ;;  %3148 = vmatprep.mubr.msk.f32.mxu0 %vm3441_vm1, %v3440_v27 }
 0x1c2   :  { %3129 = vmatmul.mubr.msk.f32.vlgmr.msra.gmra.mxu1 %vm1279_vm2, %v625_v26  ;;  %3156 = vmatprep.subr.mxu0 %v3440_v27 }
 0x1c3   :  { %3132 = vmatpush3.xpose.msk.msra.mxu1 %vm1279_vm2, %v918_v9  ;;  %3133 = vmatprep.mubr.msk.f32.mxu1 %vm3441_vm1, %v3440_v27 }
 0x1c4   :  { %3141 = vmatprep.subr.mxu1 %v3440_v27  ;;  %3149 = vmatmul.mubr.msk.f32.vlgmr.msra.gmra.mxu0 %vm1279_vm2, %v693_v10 }
 0x1c5   :  { %3158 = vmatprep.mubr.msk.f32.mxu0 %vm3441_vm1, %v3440_v27 }
 0x1c6   :  { %3134 = vmatmul.mubr.msk.f32.vlgmr.msra.gmra.mxu1 %vm1279_vm2, %v626_v11 }
 0x1c7   :  { %3142 = vmatpush3.xpose.msk.msra.mxu1 %vm1279_vm2, %v984_v12  ;;  %3143 = vmatprep.mubr.msk.f32.mxu1 %vm3441_vm1, %v3440_v27 }
 0x1c8   :  { %3151 = vmatprep.subr.mxu1 %v3440_v27 }
 0x1ca   :  { %3144 = vmatmul.mubr.msk.f32.vlgmr.msra.gmra.mxu1 %vm1279_vm2, %v692_v14 }
 0x1cb   :  { %3152 = vmatpush3.xpose.msk.msra.mxu1 %vm1279_vm2, %v986_v16  ;;  %3153 = vmatprep.mubr.msk.f32.mxu1 %vm3441_vm1, %v3440_v27 }
 0x1cc   :  { %3161 = vmatprep.subr.mxu1 %v3440_v27 }
 0x1ce   :  { %3154 = vmatmul.mubr.msk.f32.vlgmr.msra.gmra.mxu1 %vm1279_vm2, %v694_v17 }
 0x1cf   :  { %3163 = vmatprep.mubr.msk.f32.mxu1 %vm3441_vm1, %v3440_v27 }
 0x27a   :  { %v1352_v22 = vpop.f32.mrf.mxu1 }
 0x27b   :  { %v1888_v23 = vsel %vm1279_vm2, %v1352_v22, -inf }
 0x27c   :  { %1889 = vmax.xlane.f32.xlu0 %v1888_v23  ;;  %v3120_v24 = vpop.f32.mrf.mxu1 }
 0x27e   :  { %v1428_v28 = vpop.f32.mrf.mxu1 }
 0x27f   :  { %v1891_v50 = vsel %vm1279_vm2, %v1428_v28, -inf }
 0x280   :  { %v3125_v34 = vpop.f32.mrf.mxu1  ;;  %v1656_v35 = vpop.f32.mrf.mxu0 }
 0x281   :  { %v1900_v36 = vsel %vm1279_vm2, %v1656_v35, -inf }
 0x282   :  { %v1504_v37 = vpop.f32.mrf.mxu1  ;;  %1901 = vmax.xlane.f32.xlu1 %v1900_v36  ;;  %v3140_v38 = vpop.f32.mrf.mxu0 }
 0x283   :  { %v1894_v13 = vsel %vm1279_vm2, %v1504_v37, -inf }
 0x284   :  { %1895 = vmax.xlane.f32.xlu0 %v1894_v13  ;;  %v3130_v15 = vpop.f32.mrf.mxu1  ;;  %v1808_v39 = vpop.f32.mrf.mxu0 }
 0x285   :  { %v1906_v40 = vsel %vm1279_vm2, %v1808_v39, -inf }
 0x286   :  { %v1580_v46 = vpop.f32.mrf.mxu1  ;;  %1907 = vmax.xlane.f32.xlu1 %v1906_v40  ;;  %v3150_v47 = vpop.f32.mrf.mxu0 }
 0x287   :  { %v1897_v25 = vsel %vm1279_vm2, %v1580_v46, -inf }
 0x288   :  { %1898 = vmax.xlane.f32.xlu0 %v1897_v25  ;;  %v3135_v48 = vpop.f32.mrf.mxu1 }
 0x28a   :  { %v1732_v51 = vpop.f32.mrf.mxu1  ;;  %1892 = vmax.xlane.f32.xlu1 %v1891_v50 }
 0x28b   :  { %v1903_v52 = vsel %vm1279_vm2, %v1732_v51, -inf }
 0x28c   :  { %1904 = vmax.xlane.f32.xlu0 %v1903_v52  ;;  %v3145_v56 = vpop.f32.mrf.mxu1 }
 0x28e   :  { %v1884_v53 = vpop.f32.mrf.mxu1 }
 0x28f   :  { %v1909_v57 = vsel %vm1279_vm2, %v1884_v53, -inf }
 0x290   :  { %1910 = vmax.xlane.f32.xlu0 %v1909_v57  ;;  %v3155_v54 = vpop.f32.mrf.mxu1 }
 0x29b   :  { %989 = vrot.lane.b32.xlu1 %v395_v55, %s3438_s23 }
 0x29f   :  { %1001 = vrot.lane.b32.xlu1 %v395_v55, %s3437_s22 }
 0x2a6   :  { %995 = vrot.lane.b32.xlu0 %v395_v55, %s3439_s6 }
 0x305   :  { %v1890_v58 = vpop.xlane.xlu0 %1889 }
 0x306   :  { %v1912_v59 = vsub.f32 %v1352_v22, %v1890_v58 }
 0x308   :  { %v1920_v32 = vmul.f32 1.442695, %v1912_v59 }
 0x30b   :  { %v1902_v60 = vpop.xlane.xlu1 %1901 }
 0x30c   :  { %v1916_v29 = vsub.f32 %v1656_v35, %v1902_v60 }
 0x30d   :  { %v1896_v30 = vpop.xlane.xlu0 %1895 }
 0x30e   :  { %v1928_v31 = vmul.f32 1.442695, %v1916_v29  ;;  %v1914_v44 = vsub.f32 %v1504_v37, %v1896_v30 }
 0x30f   :  { %v1908_v61 = vpop.xlane.xlu1 %1907 }
 0x310   :  { %3226 = vpow2.f32 %v1928_v31  ;;  %v1918_v41 = vsub.f32 %v1808_v39, %v1908_v61  ;;  %v1924_v3 = vmul.f32 1.442695, %v1914_v44 }
 0x311   :  { %v1899_v43 = vpop.xlane.xlu0 %1898  ;;  %3228 = vpow2.f32 %v1920_v32 }
 0x312   :  { %v1932_v45 = vmul.f32 1.442695, %v1918_v41  ;;  %v1915_v63 = vsub.f32 %v1580_v46, %v1899_v43 }
 0x313   :  { %v1893_v62 = vpop.xlane.xlu1 %1892 }
 0x314   :  { %v1913_v0 = vsub.f32 %v1428_v28, %v1893_v62  ;;  %3230 = vpow2.f32 %v1932_v45  ;;  %v1926_v5 = vmul.f32 1.442695, %v1915_v63 }
 0x315   :  { %v1905_v1 = vpop.xlane.xlu0 %1904 }
 0x316   :  { %v1922_v2 = vmul.f32 1.442695, %v1913_v0  ;;  %v1917_v6 = vsub.f32 %v1732_v51, %v1905_v1 }
 0x317   :  { %v990_v4 = vpop.permute.xlu1 %989 }
 0x318   :  { %3232 = vpow2.f32 %v1922_v2  ;;  %v1930_v9 = vmul.f32 1.442695, %v1917_v6 }
 0x319   :  { %v1911_v7 = vpop.xlane.xlu0 %1910  ;;  %3234 = vpow2.f32 %v1924_v3 }
 0x31a   :  { %v1919_v8 = vsub.f32 %v1884_v53, %v1911_v7  ;;  %3236 = vpow2.f32 %v1926_v5 }
 0x31b   :  { %v1002_v26 = vpop.permute.xlu1 %1001  ;;  %3238 = vpow2.f32 %v1930_v9 }
 0x31c   :  { %v1023_v10 = vcombine.low %v990_v4, %v1002_v26  ;;  %v1024_v11 = vcombine.high %v990_v4, %v1002_v26  ;;  %v1934_v19 = vmul.f32 1.442695, %v1919_v8 }
 0x31d   :  { %v3752_v12 = vpop.eup %3226  ;;  %v996_v14 = vpop.permute.xlu0 %995 }
 0x31e   :  { %v1007_v16 = vcombine.low %v395_v55, %v996_v14  ;;  %v1008_v17 = vcombine.high %v395_v55, %v996_v14  ;;  %v1031_v18 = vrot.slane %v1023_v10, %v3590_v42  ;;  %v1038_v20 = vrot.slane %v1024_v11, %v3590_v42  ;;  %v3758_v23 = vpop.eup %3228 }
 0x31f   :  { %v1948_v22 = vsel %vm1279_vm2, %v3752_v12, 0.0  ;;  %3240 = vpow2.f32 %v1934_v19  ;;  %v1936_v37 = vsel %vm1279_vm2, %v3758_v23, 0.0 }
 0x320   :  { %v1015_v24 = vrot.slane %v1007_v16, %v3590_v42  ;;  %v1022_v28 = vrot.slane %v1008_v17, %v3590_v42  ;;  %1949 = vadd.xlane.f32.xlu1 %v1948_v22 }
 0x321   :  { %v3764_v38 = vpop.eup %3230 }
 0x322   :  { %v1039_v33 = vcombine.low %v1015_v24, %v1031_v18  ;;  %v1040_v34 = vcombine.high %v1015_v24, %v1031_v18  ;;  %v1055_v35 = vcombine.low %v1022_v28, %v1038_v20  ;;  %v1056_v36 = vcombine.high %v1022_v28, %v1038_v20 }
 0x323   :  { %v1954_v51 = vsel %vm1279_vm2, %v3764_v38, 0.0 }
 0x324   :  { %v1047_v13 = vrot.slane %v1039_v33, %v3593_v49  ;;  %v1054_v15 = vrot.slane %v1040_v34, %v3593_v49  ;;  %v1063_v39 = vrot.slane %v1055_v35, %v3593_v49  ;;  %v1070_v40 = vrot.slane %v1056_v36, %v3593_v49  ;;  %1937 = vadd.xlane.f32.xlu1 %v1936_v37 }
 0x325   :  { %v3770_v46 = vpop.eup %3232 }
 0x326   :  { %v1143_v47 = vcombine.low %v1047_v13, %v1054_v15  ;;  %v2992_v25 = vcombine.high %v1047_v13, %v1054_v15  ;;  %v1159_v48 = vcombine.low %v1063_v39, %v1070_v40  ;;  %v2993_v50 = vcombine.high %v1063_v39, %v1070_v40  ;;  %v3776_v56 = vpop.eup %3234 }
 0x327   :  { %v1939_v52 = vsel %vm1279_vm2, %v3770_v46, 0.0  ;;  %v3782_v58 = vpop.eup %3236  ;;  %v1942_v31 = vsel %vm1279_vm2, %v3776_v56, 0.0 }
 0x328   :  { %v1150_v53 = vrot.slane %v1143_v47, %v3590_v42  ;;  %v1158_v57 = vrot.slane %v2992_v25, %v3590_v42  ;;  %v1166_v54 = vrot.slane %v1159_v48, %v3590_v42  ;;  %v1174_v55 = vrot.slane %v2993_v50, %v3590_v42  ;;  %1955 = vadd.xlane.f32.xlu1 %v1954_v51  ;;  %v3791_v44 = vpop.eup %3238 }
 0x329   :  { %1940 = vadd.xlane.f32.xlu0 %v1939_v52  ;;  %v1945_v32 = vsel %vm1279_vm2, %v3782_v58, 0.0  ;;  %v1951_v3 = vsel %vm1279_vm2, %v3791_v44, 0.0 }
 0x32a   :  { %v1175_v59 = vcombine.low %v1150_v53, %v1158_v57  ;;  %v1191_v60 = vcombine.low %v1166_v54, %v1174_v55  ;;  %v1176_v29 = vcombine.high %v1150_v53, %v1158_v57  ;;  %v1192_v30 = vcombine.high %v1166_v54, %v1174_v55 }
 0x32c   :  { %1943 = vadd.xlane.f32.xlu1 %v1942_v31  ;;  %v1183_v61 = vrot.slane %v1175_v59, %v3593_v49  ;;  %v1199_v41 = vrot.slane %v1191_v60, %v3593_v49  ;;  %v1190_v43 = vrot.slane %v1176_v29, %v3593_v49  ;;  %v1206_v45 = vrot.slane %v1192_v30, %v3593_v49  ;;  %v3794_v2 = vpop.eup %3240 }
 0x32d   :  { %1946 = vadd.xlane.f32.xlu0 %v1945_v32  ;;  %v1957_v4 = vsel %vm1279_vm2, %v3794_v2, 0.0 }
 0x32e   :  { %v1207_v62 = vcombine.low %v1183_v61, %v1199_v41  ;;  %v1208_v63 = vcombine.high %v1183_v61, %v1199_v41  ;;  %v1209_v0 = vcombine.low %v1190_v43, %v1206_v45  ;;  %v1210_v1 = vcombine.high %v1190_v43, %v1206_v45 }
 0x330   :  { %3157 = vmatpush3.msra.mxu0 %v1207_v62  ;;  %3162 = vmatpush3.msra.mxu1 %v1208_v63 }
 0x331   :  { %1952 = vadd.xlane.f32.xlu0 %v1951_v3  ;;  %3166 = vmatprep.subr.mxu0 %v3440_v27 }
 0x332   :  { %3171 = vmatprep.subr.mxu1 %v3440_v27 }
 0x335   :  { %1958 = vadd.xlane.f32.xlu0 %v1957_v4 }
 0x33d   :  { %997 = vrot.lane.b32.xlu1 %v3739_v21, %s3439_s6 }
 0x341   :  { %1003 = vrot.lane.b32.xlu1 %v3739_v21, %s3437_s22 }
 0x34b   :  { %991 = vrot.lane.b32.xlu0 %v3739_v21, %s3438_s23 }
 0x3a9   :  { %v1950_v5 = vpop.xlane.xlu1 %1949 }
 0x3ad   :  { %v1938_v6 = vpop.xlane.xlu1 %1937 }
 0x3ae   :  { %3242 = vrcp.f32 %v1938_v6 }
 0x3b1   :  { %v1956_v7 = vpop.xlane.xlu1 %1955 }
 0x3b2   :  { %v1941_v8 = vpop.xlane.xlu0 %1940 }
 0x3b3   :  { %3244 = vrcp.f32 %v1941_v8 }
 0x3b5   :  { %v1944_v26 = vpop.xlane.xlu1 %1943 }
 0x3b6   :  { %v1947_v9 = vpop.xlane.xlu0 %1946  ;;  %3246 = vrcp.f32 %v1944_v26 }
 0x3b7   :  { %3248 = vrcp.f32 %v1947_v9 }
 0x3b8   :  { %3250 = vrcp.f32 %v1950_v5 }
 0x3b9   :  { %v998_v14 = vpop.permute.xlu1 %997 }
 0x3ba   :  { %v1953_v10 = vpop.xlane.xlu0 %1952  ;;  %v1075_v19 = vcombine.low %v3739_v21, %v998_v14  ;;  %v1076_v20 = vcombine.high %v3739_v21, %v998_v14 }
 0x3bb   :  { %v3243_v11 = vpop.eup %3242  ;;  %3252 = vrcp.f32 %v1953_v10 }
 0x3bc   :  { %v1968_v16 = vmul.f32 %v3243_v11, %v3758_v23  ;;  %v1083_v36 = vrot.slane %v1075_v19, %v3590_v42  ;;  %v1090_v37 = vrot.slane %v1076_v20, %v3590_v42  ;;  %3254 = vrcp.f32 %v1956_v7 }
 0x3bd   :  { %v1004_v24 = vpop.permute.xlu1 %1003 }
 0x3be   :  { %v1959_v17 = vpop.xlane.xlu0 %1958  ;;  %3159 = vmatmul.mubr.msk.f32.vlgmr.msra.gmra.mxu0 %vm1279_vm2, %v1968_v16 }
 0x3bf   :  { %3167 = vmatpush3.msra.mxu0 %v1209_v0  ;;  %3168 = vmatprep.mubr.msk.f32.mxu0 %vm3441_vm1, %v3440_v27  ;;  %3256 = vrcp.f32 %v1959_v17 }
 0x3c0   :  { %v3245_v18 = vpop.eup %3244  ;;  %3176 = vmatprep.subr.mxu0 %v3440_v27 }
 0x3c1   :  { %v1969_v22 = vmul.f32 %v3245_v18, %v3770_v46 }
 0x3c2   :  { %v992_v28 = vpop.permute.xlu0 %991 }
 0x3c3   :  { %v3247_v33 = vpop.eup %3246  ;;  %v1091_v23 = vcombine.low %v992_v28, %v1004_v24  ;;  %v1092_v34 = vcombine.high %v992_v28, %v1004_v24  ;;  %3164 = vmatmul.mubr.msk.f32.vlgmr.msra.gmra.mxu1 %vm1279_vm2, %v1969_v22 }
 0x3c4   :  { %v3249_v35 = vpop.eup %3248  ;;  %3172 = vmatpush3.msra.mxu1 %v1210_v1  ;;  %3173 = vmatprep.mubr.msk.f32.mxu1 %vm3441_vm1, %v3440_v27  ;;  %v1970_v21 = vmul.f32 %v3247_v33, %v3776_v56 }
 0x3c5   :  { %v1099_v13 = vrot.slane %v1091_v23, %v3590_v42  ;;  %v1106_v15 = vrot.slane %v1092_v34, %v3590_v42  ;;  %v1971_v39 = vmul.f32 %v3249_v35, %v3782_v58  ;;  %3181 = vmatprep.subr.mxu1 %v3440_v27  ;;  %v3251_v61 = vpop.eup %3250 }
 0x3c6   :  { %3169 = vmatmul.mubr.msk.f32.vlgmr.msra.gmra.mxu0 %vm1279_vm2, %v1970_v21  ;;  %v1972_v4 = vmul.f32 %v3251_v61, %v3752_v12 }
 0x3c7   :  { %v1107_v40 = vcombine.low %v1083_v36, %v1099_v13  ;;  %v1108_v46 = vcombine.high %v1083_v36, %v1099_v13  ;;  %v1123_v47 = vcombine.low %v1090_v37, %v1106_v15  ;;  %v1124_v25 = vcombine.high %v1090_v37, %v1106_v15  ;;  %3174 = vmatmul.mubr.msk.f32.vlgmr.msra.gmra.mxu1 %vm1279_vm2, %v1971_v39 }
 0x3c8   :  { %3178 = vmatprep.mubr.msk.f32.mxu0 %vm3441_vm1, %v3440_v27  ;;  %3183 = vmatprep.mubr.msk.f32.mxu1 %vm3441_vm1, %v3440_v27  ;;  %v3253_v41 = vpop.eup %3252 }
 0x3c9   :  { %v1115_v48 = vrot.slane %v1107_v40, %v3593_v49  ;;  %v1122_v50 = vrot.slane %v1108_v46, %v3593_v49  ;;  %v1131_v51 = vrot.slane %v1123_v47, %v3593_v49  ;;  %v1138_v52 = vrot.slane %v1124_v25, %v3593_v49  ;;  %v3255_v0 = vpop.eup %3254 }
 0x3ca   :  { %v1973_v5 = vmul.f32 %v3253_v41, %v3791_v44  ;;  %v1974_v26 = vmul.f32 %v3255_v0, %v3764_v38 }
 0x3cb   :  { %v1211_v56 = vcombine.low %v1115_v48, %v1122_v50  ;;  %v2994_v53 = vcombine.high %v1115_v48, %v1122_v50  ;;  %v1227_v57 = vcombine.low %v1131_v51, %v1138_v52  ;;  %v2995_v54 = vcombine.high %v1131_v51, %v1138_v52 }
 0x3cc   :  { %v3257_v6 = vpop.eup %3256 }
 0x3cd   :  { %v1218_v55 = vrot.slane %v1211_v56, %v3590_v42  ;;  %v1226_v58 = vrot.slane %v2994_v53, %v3590_v42  ;;  %v1234_v59 = vrot.slane %v1227_v57, %v3590_v42  ;;  %v1242_v60 = vrot.slane %v2995_v54, %v3590_v42 }
 0x3ce   :  { %v1975_v12 = vmul.f32 %v3257_v6, %v3794_v2 }
 0x3cf   :  { %v1243_v29 = vcombine.low %v1218_v55, %v1226_v58  ;;  %v1259_v30 = vcombine.low %v1234_v59, %v1242_v60  ;;  %v1244_v31 = vcombine.high %v1218_v55, %v1226_v58  ;;  %v1260_v32 = vcombine.high %v1234_v59, %v1242_v60 }
 0x3d1   :  { %v1251_v43 = vrot.slane %v1243_v29, %v3593_v49  ;;  %v1267_v45 = vrot.slane %v1259_v30, %v3593_v49  ;;  %v1258_v62 = vrot.slane %v1244_v31, %v3593_v49  ;;  %v1274_v63 = vrot.slane %v1260_v32, %v3593_v49 }
 0x3d3   :  { %v1275_v1 = vcombine.low %v1251_v43, %v1267_v45  ;;  %v1276_v3 = vcombine.high %v1251_v43, %v1267_v45  ;;  %v1277_v7 = vcombine.low %v1258_v62, %v1274_v63  ;;  %v1278_v8 = vcombine.high %v1258_v62, %v1274_v63 }
 0x3d5   :  { %3177 = vmatpush3.msra.mxu0 %v1275_v1  ;;  %3182 = vmatpush3.msra.mxu1 %v1276_v3 }
 0x3d6   :  { %3179 = vmatmul.mubr.msk.f32.vlgmr.msra.gmra.mxu0 %vm1279_vm2, %v1972_v4  ;;  %3184 = vmatmul.mubr.msk.f32.vlgmr.msra.gmra.mxu1 %vm1279_vm2, %v1973_v5 }
 0x3d7   :  { %3186 = vmatprep.subr.mxu0 %v3440_v27  ;;  %3191 = vmatprep.subr.mxu1 %v3440_v27 }
 0x3d8   :  { %3187 = vmatpush3.msra.mxu0 %v1277_v7  ;;  %3192 = vmatpush3.msra.mxu1 %v1278_v8 }
 0x3d9   :  { %3188 = vmatprep.mubr.msk.f32.mxu0 %vm3441_vm1, %v3440_v27  ;;  %3193 = vmatprep.mubr.msk.f32.mxu1 %vm3441_vm1, %v3440_v27 }
 0x3da   :  { %3189 = vmatmul.mubr.msk.f32.vlgmr.msra.gmra.mxu0 %vm1279_vm2, %v1974_v26  ;;  %3194 = vmatmul.mubr.msk.f32.vlgmr.msra.gmra.mxu1 %vm1279_vm2, %v1975_v12 }
 0x47e   :  { %v2045_v44 = vpop.f32.mrf.mxu0 }
 0x480   :  { %v3160_v9 = vpop.f32.mrf.mxu0 }
 0x483   :  { %v2118_v10 = vpop.f32.mrf.mxu1 }
 0x485   :  { %v3165_v11 = vpop.f32.mrf.mxu1 }
 0x486   :  { %v2191_v14 = vpop.f32.mrf.mxu0  ;;  %v2866_v11 = vld [vmem:[#allocation13 + $0x10] sm:$0xff] }
 0x487   :  { %v2560_v16 = vcombine.low %v2045_v44, %v2191_v14  ;;  %v2561_v17 = vcombine.high %v2045_v44, %v2191_v14  ;;  %v2264_v38 = vpop.f32.mrf.mxu1 }
 0x488   :  { %v2576_v18 = vcombine.low %v2118_v10, %v2264_v38  ;;  %v2577_v2 = vcombine.high %v2118_v10, %v2264_v38  ;;  %v3170_v19 = vpop.f32.mrf.mxu0  ;;  %v2867_v10 = vld [vmem:[#allocation13 + $0x18] sm:$0xff] }
 0x489   :  { %v2568_v20 = vrot.slane %v2560_v16, %v3590_v42  ;;  %v2575_v22 = vrot.slane %v2561_v17, %v3590_v42  ;;  %v3175_v27 = vpop.f32.mrf.mxu1  ;;  %3196 = vmatprep.subr.mxu0 %v2867_v10 }
 0x48a   :  { %v2584_v24 = vrot.slane %v2576_v18, %v3590_v42  ;;  %v2591_v28 = vrot.slane %v2577_v2, %v3590_v42  ;;  %3197 = vmatpush3.msra.mxu0 %v2867_v10  ;;  %v2864_v27 = vld [vmem:[#allocation13] sm:$0xff] }
 0x48b   :  { %3198 = vmatprep.subr.mxu0 %v2866_v11 }
 0x48c   :  { %v2592_v33 = vcombine.low %v2568_v20, %v2584_v24  ;;  %v2593_v23 = vcombine.high %v2568_v20, %v2584_v24  ;;  %v2608_v34 = vcombine.low %v2575_v22, %v2591_v28  ;;  %v2609_v35 = vcombine.high %v2575_v22, %v2591_v28  ;;  %3199 = vmatpush3.msra.mxu0 %v2866_v11  ;;  %v2865_v22 = vld [vmem:[#allocation13 + $0x8] sm:$0xff] }
 0x48d   :  { %3200 = vmatprep.subr.mxu0 %v2865_v22 }
 0x48e   :  { %v2600_v36 = vrot.slane %v2592_v33, %v3593_v49  ;;  %v2607_v21 = vrot.slane %v2593_v23, %v3593_v49  ;;  %v2616_v37 = vrot.slane %v2608_v34, %v3593_v49  ;;  %v2623_v13 = vrot.slane %v2609_v35, %v3593_v49  ;;  %3201 = vmatpush3.msra.mxu0 %v2865_v22 }
 0x48f   :  { %3202 = vmatprep.subr.mxu0 %v2864_v27 }
 0x490   :  { %v2696_v15 = vcombine.low %v2600_v36, %v2607_v21  ;;  %v3020_v39 = vcombine.high %v2600_v36, %v2607_v21  ;;  %v2712_v40 = vcombine.low %v2616_v37, %v2623_v13  ;;  %v3021_v46 = vcombine.high %v2616_v37, %v2623_v13  ;;  %3203 = vmatpush3.msra.mxu0 %v2864_v27 }
 0x492   :  { %v2703_v47 = vrot.slane %v2696_v15, %v3590_v42  ;;  %v2711_v25 = vrot.slane %v3020_v39, %v3590_v42  ;;  %v2719_v48 = vrot.slane %v2712_v40, %v3590_v42  ;;  %v2727_v50 = vrot.slane %v3021_v46, %v3590_v42 }
 0x494   :  { %v2728_v51 = vcombine.low %v2703_v47, %v2711_v25  ;;  %v2744_v52 = vcombine.low %v2719_v48, %v2727_v50  ;;  %v2729_v56 = vcombine.high %v2703_v47, %v2711_v25  ;;  %v2745_v53 = vcombine.high %v2719_v48, %v2727_v50 }
 0x496   :  { %v2337_v57 = vpop.f32.mrf.mxu0  ;;  %v2410_v54 = vpop.f32.mrf.mxu1  ;;  %v3871_v55 = vrot.slane %v2728_v51, %v3593_v49  ;;  %v3874_v58 = vrot.slane %v2744_v52, %v3593_v49  ;;  %v2743_v31 = vrot.slane %v2729_v56, %v3593_v49  ;;  %v2759_v32 = vrot.slane %v2745_v53, %v3593_v49 }
 0x498   :  { %v3180_v59 = vpop.f32.mrf.mxu0  ;;  %v3185_v60 = vpop.f32.mrf.mxu1  ;;  %v2761_v29 = vcombine.high %v3871_v55, %v3874_v58  ;;  %v2760_v30 = vcombine.low %v3871_v55, %v3874_v58  ;;  %v2762_v3 = vcombine.low %v2743_v31, %v2759_v32  ;;  %v2763_v9 = vcombine.high %v2743_v31, %v2759_v32  ;;  %v3024_v55 = vld [vmem:[%s3930_s8] ss:$0 sm:$0xff] }
 0x49a   :  { %v2556_v61 = vpop.f32.mrf.mxu1  ;;  %2834 = vrot.lane.b32.xlu0 %v2761_v29, %s3431_s15  ;;  %v2483_v41 = vpop.f32.mrf.mxu0 }
 0x49b   :  { %v2644_v43 = vcombine.low %v2410_v54, %v2556_v61  ;;  %v2645_v45 = vcombine.high %v2410_v54, %v2556_v61  ;;  %v2628_v62 = vcombine.low %v2337_v57, %v2483_v41  ;;  %v2629_v63 = vcombine.high %v2337_v57, %v2483_v41 }
 0x49c   :  { %v3190_v0 = vpop.f32.mrf.mxu0  ;;  %v3195_v1 = vpop.f32.mrf.mxu1 }
 0x49d   :  { %v2652_v4 = vrot.slane %v2644_v43, %v3590_v42  ;;  %v2659_v5 = vrot.slane %v2645_v45, %v3590_v42  ;;  %v2636_v6 = vrot.slane %v2628_v62, %v3590_v42  ;;  %v2643_v7 = vrot.slane %v2629_v63, %v3590_v42 }
 0x49e   :  { %2842 = vrot.lane.b32.xlu0 %v2762_v3, %s3444_s24 }
 0x49f   :  { %v2660_v8 = vcombine.low %v2636_v6, %v2652_v4  ;;  %v2661_v26 = vcombine.high %v2636_v6, %v2652_v4  ;;  %v2676_v12 = vcombine.low %v2643_v7, %v2659_v5  ;;  %v2677_v44 = vcombine.high %v2643_v7, %v2659_v5 }
 0x4a1   :  { %v2668_v14 = vrot.slane %v2660_v8, %v3593_v49  ;;  %v2675_v16 = vrot.slane %v2661_v26, %v3593_v49  ;;  %v2684_v17 = vrot.slane %v2676_v12, %v3593_v49  ;;  %v2691_v38 = vrot.slane %v2677_v44, %v3593_v49 }
 0x4a2   :  { %2850 = vrot.lane.b32.xlu0 %v2763_v9, %s3445_s1 }
 0x4a3   :  { %v2764_v18 = vcombine.low %v2668_v14, %v2675_v16  ;;  %v3022_v2 = vcombine.high %v2668_v14, %v2675_v16  ;;  %v2780_v19 = vcombine.low %v2684_v17, %v2691_v38  ;;  %v3023_v20 = vcombine.high %v2684_v17, %v2691_v38 }
 0x4a5   :  { %v2771_v24 = vrot.slane %v2764_v18, %v3590_v42  ;;  %v2779_v28 = vrot.slane %v3022_v2, %v3590_v42  ;;  %v2787_v33 = vrot.slane %v2780_v19, %v3590_v42  ;;  %v2795_v23 = vrot.slane %v3023_v20, %v3590_v42 }
 0x4a7   :  { %v2796_v34 = vcombine.low %v2771_v24, %v2779_v28  ;;  %v2812_v35 = vcombine.low %v2787_v33, %v2795_v23  ;;  %v2797_v36 = vcombine.high %v2771_v24, %v2779_v28  ;;  %v2813_v21 = vcombine.high %v2787_v33, %v2795_v23 }
 0x4a9   :  { %v2804_v37 = vrot.slane %v2796_v34, %v3593_v49  ;;  %v2820_v13 = vrot.slane %v2812_v35, %v3593_v49  ;;  %v2811_v40 = vrot.slane %v2797_v36, %v3593_v49  ;;  %v2827_v46 = vrot.slane %v2813_v21, %v3593_v49 }
 0x4ab   :  { %v2829_v15 = vcombine.high %v2804_v37, %v2820_v13  ;;  %v2828_v39 = vcombine.low %v2804_v37, %v2820_v13  ;;  %v2830_v42 = vcombine.low %v2811_v40, %v2827_v46  ;;  %v2831_v47 = vcombine.high %v2811_v40, %v2827_v46 }
 0x4ad   :  { %2836 = vrot.lane.b32.xlu1 %v2829_v15, %s3431_s15 }
 0x4b1   :  { %2844 = vrot.lane.b32.xlu1 %v2830_v42, %s3444_s24 }
 0x4b5   :  { %2852 = vrot.lane.b32.xlu1 %v2831_v47, %s3445_s1 }
 0x50c   :  { %v2835_v25 = vpop.permute.xlu0 %2834 }
 0x50d   :  { %v2856_v50 = vsel %vm1279_vm2, %v2760_v30, %v2835_v25 }
 0x510   :  { %v2843_v48 = vpop.permute.xlu0 %2842 }
 0x511   :  { %v2859_v51 = vsel %vm2858_vm3, %v2856_v50, %v2843_v48 }
 0x514   :  { %v2851_v52 = vpop.permute.xlu0 %2850 }
 0x515   :  { %v2862_v49 = vsel %vm2861_vm4, %v2859_v51, %v2851_v52 }
 0x516   :  { %3204 = vmatprep.mubr.msk.f32.mxu0 %vm139_vm0, %v2862_v49 }
 0x51f   :  { %v2837_v56 = vpop.permute.xlu1 %2836 }
 0x520   :  { %v2857_v57 = vsel %vm1279_vm2, %v2828_v39, %v2837_v56 }
 0x523   :  { %v2845_v53 = vpop.permute.xlu1 %2844 }
 0x524   :  { %v2860_v54 = vsel %vm2858_vm3, %v2857_v57, %v2845_v53 }
 0x527   :  { %v2853_v59 = vpop.permute.xlu1 %2852 }
 0x528   :  { %v2863_v60 = vsel %vm2861_vm4, %v2860_v54, %v2853_v59 }
 0x529   :  { %3205 = vmatmul.mubr.msk.f32.vlgmr.msra.gmra.mxu0 %vm139_vm0, %v2863_v60 }
 0x5e9   :  { %v3206_v58 = vpop.f32.mrf.mxu0 }
 0x5ea   :  { %v2953_v29 = vadd.f32 %v3206_v58, %v3024_v55 }
 0x5eb   :  { %v2947_v30 = vpop.f32.mrf.mxu0 }
 0x5ec   :  { %2957 = vst.msk [vmem:[#allocation14 + $0x8] sm:$0xff] %vm139_vm0, %v2953_v29  ;;  %v2948_v31 = vadd.f32 %v3024_v55, %v2947_v30 }
 0x5ee   :  { %2956 = vst.msk [vmem:[#allocation14] sm:$0xff] %vm139_vm0, %v2948_v31 }
 0x5ef   :  { %3409 = shalt.err (!%p3406_p11)
}
 0x5f0   :  { %2969 = dma.vmem_to_hbm [thread:$0]  %s2964_s27, 256, %s3931_s9, [#allocation4], %s3430_s14, %s3430_s14, %s3431_s15  }
 0x5f1   :  { %3426 = dma.done.wait [#allocation4], 256  }
 0x5f2   :  { %3427 = vsyncadd [#allocation4], 4294967040 }
 0x5f3   :  { %2973 = vsyncpa [#allocation3], 1 }
 0x5f4   :  { %2974 = vsyncpa [#allocation6], 1 }
 0x5f5   :  { %2975 = vsyncpa [#allocation9], 1 }
 0x5f6   :  { %2976 = vsyncpa [#allocation12], 1 }
 0x5f7   :  { %2977 = vsyncpa [#allocation4], 1 }

</bundles_post_ra>
